<compile_context>
chip_gen: v7x
topology: tpu7x:2x2x1
jax: 0.10.0
libtpu: 0.0.40
codegen_flags: <defaults>
</compile_context>

<pallas_src>
import functools
from typing import NamedTuple

import jax
import jax.numpy as jnp
from jax.experimental import pallas as pl
from jax.experimental.pallas import tpu as pltpu


def _round_up(x: int, m: int) -> int:
    return (x + m - 1) // m * m


def _mtfc_kernel(x_ref, w_ref, b_ref, o_ref):
    # One MXU matmul for all four fused heads; f32 accumulation, f32 bias add.
    acc = jnp.dot(x_ref[...], w_ref[...], preferred_element_type=jnp.float32)
    acc = acc + b_ref[...]
    n_out = o_ref.shape[-1]                 # compact fused width (static)
    o_ref[...] = acc[:, :n_out].astype(o_ref.dtype)


class MtFcParams(NamedTuple):
    W: jax.Array  # (n_in, n_pad)  fused heads along axis 1, lane-padded
    b: jax.Array  # (1, n_pad)     fused bias, lane-padded, kept in f32


def init_mtfc_params(key, n_in, n_step, n_experience, n_rsd=1,
                     dtype=jnp.float32):
    """PyTorch-Linear-style init (uniform +-1/sqrt(fan_in)); the four heads
    are fused along the output axis and zero-padded to 128 lanes ONCE here
    (resident-weight layout), never inside the forward pass."""
    bound = 1.0 / (n_in ** 0.5)
    head_sizes = (n_step, n_experience, n_rsd, 1)   # fc1, fc2, fc3, fc4
    ws, bs = [], []
    for n_out in head_sizes:
        key, kw, kb = jax.random.split(key, 3)
        ws.append(jax.random.uniform(kw, (n_in, n_out), dtype, -bound, bound))
        bs.append(jax.random.uniform(kb, (n_out,), dtype, -bound, bound))
    n_total = sum(head_sizes)
    n_pad = max(128, _round_up(n_total, 128))       # matches v5e 128x128 MXU
    W = jnp.zeros((n_in, n_pad), dtype).at[:, :n_total].set(
        jnp.concatenate(ws, axis=1))
    b = jnp.zeros((1, n_pad), jnp.float32).at[:, :n_total].set(
        jnp.concatenate(bs, axis=0).astype(jnp.float32)[None, :])
    return MtFcParams(W=W, b=b), head_sizes


def cast_mtfc_weights(params: MtFcParams, dtype) -> MtFcParams:
    """One-time, init-time cast of the streamed weight matrix (e.g. bf16 for
    v6e/v7x, fp8 on v7x if precision allows).  Bias stays f32: the in-kernel
    bias add and accumulation remain full precision."""
    return MtFcParams(W=params.W.astype(dtype), b=params.b)


@functools.partial(jax.jit, static_argnames=("head_sizes", "tm", "impl"))
def mtfc_forward(x, params: MtFcParams, head_sizes, tm=1024, impl="auto"):
    """Equivalent of MtFc.forward: returns (step, experience, rsd, s)."""
    B, n_in = x.shape
    W, b = params.W, params.b
    n_pad = W.shape[1]
    n_total = sum(head_sizes)
    out_dtype = x.dtype

    if impl == "auto":
        # Tiny batches are launch/pipeline-overhead bound: plain fused XLA
        # (one GEMM + bias, heads sliced out) is as fast or faster there.
        impl = "pallas" if B >= 1024 else "xla"

    if impl == "xla":
        out = (x @ W[:, :n_total] + b[0, :n_total]).astype(out_dtype)
    else:
        # --- M tiling ---------------------------------------------------
        B8 = _round_up(B, 8)
        tm_eff = min(tm, B8)
        # v7x has 2 TensorCores; "parallel" only helps with >= 2 grid steps.
        if B8 >= 16:
            tm_eff = min(tm_eff, _round_up(pl.cdiv(B8, 2), 8))
        tm_eff = max(tm_eff, 8)
        grid = (pl.cdiv(B, tm_eff),)        # ragged last block is masked

        # --- VMEM budget (lane-padded, double-buffered tiles) ------------
        wb = jnp.dtype(W.dtype).itemsize
        xb = jnp.dtype(x.dtype).itemsize
        ob = jnp.dtype(out_dtype).itemsize
        lanes_in = _round_up(n_in, 128)
        vmem_need = (2 * n_in * n_pad * wb          # W (double-buffered)
                     + 2 * 8 * n_pad * 4            # bias (sublane-padded)
                     + 2 * tm_eff * lanes_in * xb   # x tile x 2 buffers
                     + 2 * tm_eff * n_pad * ob)     # out tile x 2 buffers
        # 48 MiB cap keeps headroom under v7x's 64 MiB physical VMEM; on
        # v5e/v6e (128 MiB) this could be raised if W or tm ever grow.
        vmem_limit = int(min(48 * 1024 * 1024,
                             max(2 * vmem_need, 8 * 1024 * 1024)))

        # NOTE: no K grid axis on purpose — resident W is ~n_in*128*itemsize
        # bytes, so even n_in in the tens of thousands fits in VMEM; a K axis
        # would only add per-step overhead and accumulator traffic.
        # TODO(synk): pin W/b with pipeline_mode=pl.Buffered(1) (constant
        # index_map, no re-fetch needed) once that path is exercised; at the
        # current W size the extra buffer is negligible.
        out = pl.pallas_call(
            _mtfc_kernel,
            out_shape=jax.ShapeDtypeStruct((B, n_total), out_dtype),
            grid=grid,
            in_specs=[
                pl.BlockSpec((tm_eff, n_in), lambda i: (i, 0)),   # x tile
                pl.BlockSpec((n_in, n_pad), lambda i: (0, 0)),    # W resident
                pl.BlockSpec((1, n_pad), lambda i: (0, 0)),       # b resident
            ],
            out_specs=pl.BlockSpec((tm_eff, n_total), lambda i: (i, 0)),
            compiler_params=pltpu.CompilerParams(
                dimension_semantics=("parallel",),
                vmem_limit_bytes=vmem_limit,
            ),
        )(x, W, b)

    # Split the compact fused slab into the four heads (glue, no compute).
    outs = []
    off = 0
    for s in head_sizes:
        outs.append(out[:, off:off + s])
        off += s
    return tuple(outs)  # (step, experience, rsd, s)


if __name__ == "__main__":
    # Small shapes consistent with the module: x is (batch, n_in).
    B, n_in, n_step, n_experience, n_rsd = 8, 32, 8, 4, 1

    key = jax.random.PRNGKey(0)
    key, kx = jax.random.split(key)
    x = jax.random.normal(kx, (B, n_in), jnp.float32)
    params, head_sizes = init_mtfc_params(key, n_in, n_step, n_experience,
                                          n_rsd)
    n_total = sum(head_sizes)

    def reference(xv):
        full = xv.astype(jnp.float32) @ params.W[:, :n_total] + params.b[0, :n_total]
        outs, off = [], 0
        for s in head_sizes:
            outs.append(full[:, off:off + s])
            off += s
        return tuple(outs)

    # 1) Pallas kernel, f32, tiny batch (single grid step).
    step, experience, rsd, s = mtfc_forward(x, params, head_sizes,
                                            impl="pallas")
    jax.block_until_ready((step, experience, rsd, s))
    for got, ref in zip((step, experience, rsd, s), reference(x)):
        assert got.shape == ref.shape, (got.shape, ref.shape)
        assert jnp.allclose(got, ref, atol=1e-5, rtol=1e-5)

    # 2) Pallas kernel, ragged batch -> 2 grid steps (both TCs on v7x),
    #    masked trailing block, no jnp.pad of x.
    key, kx2 = jax.random.split(key)
    x2 = jax.random.normal(kx2, (100, n_in), jnp.float32)
    outs2 = mtfc_forward(x2, params, head_sizes, impl="pallas")
    jax.block_until_ready(outs2)
    for got, ref in zip(outs2, reference(x2)):
        assert got.shape == ref.shape, (got.shape, ref.shape)
        assert jnp.allclose(got, ref, atol=1e-5, rtol=1e-5)

    # 3) bf16 streaming path: weights cast ONCE at init, caller passes bf16 x;
    #    accumulation / bias add stay f32 inside the kernel.
    params_bf16 = cast_mtfc_weights(params, jnp.bfloat16)
    outs_bf16 = mtfc_forward(x.astype(jnp.bfloat16), params_bf16, head_sizes,
                             impl="pallas")
    jax.block_until_ready(outs_bf16)
    for got, ref in zip(outs_bf16, reference(x)):
        assert got.shape == ref.shape, (got.shape, ref.shape)
        assert jnp.allclose(got.astype(jnp.float32), ref,
                            atol=5e-2, rtol=5e-2)

    # 4) Auto dispatch: at B=8 the overhead-bound regime takes the fused
    #    XLA path; results must match the same reference.
    outs_auto = mtfc_forward(x, params, head_sizes)   # impl="auto"
    jax.block_until_ready(outs_auto)
    for got, ref in zip(outs_auto, reference(x)):
        assert got.shape == ref.shape, (got.shape, ref.shape)
        assert jnp.allclose(got, ref, atol=1e-5, rtol=1e-5)

    print("KERNEL_OK")
</pallas_src>

<mosaic_0001>
module attributes {stable_mosaic.version = 11 : i64} {
  func.func @_mtfc_kernel(%arg0: i32, %arg1: memref<8x32xf32, #tpu.memory_space<vmem>>, %arg2: memref<32x128xf32, #tpu.memory_space<vmem>>, %arg3: memref<1x128xf32, #tpu.memory_space<vmem>>, %arg4: memref<8x14xf32, #tpu.memory_space<vmem>>) attributes {dimension_semantics = [#tpu.dimension_semantics<parallel>], iteration_bounds = array<i64: 1>, scalar_prefetch = 0 : i64, scratch_operands = 0 : i64, tpu.core_type = #tpu.core_type<tc>, window_params = [{transform_indices = @transform_0, window_bounds = array<i64: 8, 32>}, {pipeline_mode = #tpu.pipeline_mode<synchronous>, transform_indices = @transform_1, window_bounds = array<i64: 32, 128>}, {pipeline_mode = #tpu.pipeline_mode<synchronous>, transform_indices = @transform_2, window_bounds = array<i64: 1, 128>}, {transform_indices = @transform_3, window_bounds = array<i64: 8, 14>}]} {
    %c0 = arith.constant 0 : index
    %c0_0 = arith.constant 0 : index
    %0 = vector.load %arg1[%c0, %c0_0] : memref<8x32xf32, #tpu.memory_space<vmem>>, vector<8x32xf32>
    %c0_1 = arith.constant 0 : index
    %c0_2 = arith.constant 0 : index
    %1 = vector.load %arg2[%c0_1, %c0_2] : memref<32x128xf32, #tpu.memory_space<vmem>>, vector<32x128xf32>
    %cst = arith.constant dense<0.000000e+00> : vector<8x128xf32>
    %2 = tpu.matmul %0, %1, %cst {dimension_numbers = #tpu.dot_dimension_numbers<[1], [0], [0], [1], [0, 0, 1, 1], [], []>} : vector<8x32xf32>, vector<32x128xf32>, vector<8x128xf32> -> vector<8x128xf32>
    %c0_3 = arith.constant 0 : index
    %c0_4 = arith.constant 0 : index
    %3 = vector.load %arg3[%c0_3, %c0_4] : memref<1x128xf32, #tpu.memory_space<vmem>>, vector<1x128xf32>
    %4 = vector.broadcast %3 : vector<1x128xf32> to vector<8x128xf32>
    %5 = arith.addf %2, %4 : vector<8x128xf32>
    %6 = vector.extract_strided_slice %5 {offsets = [0, 0], sizes = [8, 14], strides = [1, 1]} : vector<8x128xf32> to vector<8x14xf32>
    %c0_5 = arith.constant 0 : index
    %c0_6 = arith.constant 0 : index
    %7 = vector.load %arg4[%c0_5, %c0_6] : memref<8x14xf32, #tpu.memory_space<vmem>>, vector<8x14xf32>
    tpu.vector_store %arg4[%c0_5, %c0_6], %6 {strides = array<i32>} : memref<8x14xf32, #tpu.memory_space<vmem>>, vector<8x14xf32>,
    return
  }
  func.func @transform_0(%arg0: i32) -> (i32, i32) {
    %c0_i32 = arith.constant 0 : i32
    %c0_i32_0 = arith.constant 0 : i32
    return %arg0, %c0_i32 : i32, i32
  }
  func.func @transform_1(%arg0: i32) -> (i32, i32) {
    %c0_i32 = arith.constant 0 : i32
    %c0_i32_0 = arith.constant 0 : i32
    %c0_i32_1 = arith.constant 0 : i32
    return %c0_i32, %c0_i32_0 : i32, i32
  }
  func.func @transform_2(%arg0: i32) -> (i32, i32) {
    %c0_i32 = arith.constant 0 : i32
    %c0_i32_0 = arith.constant 0 : i32
    %c0_i32_1 = arith.constant 0 : i32
    return %c0_i32, %c0_i32_0 : i32, i32
  }
  func.func @transform_3(%arg0: i32) -> (i32, i32) {
    %c0_i32 = arith.constant 0 : i32
    %c0_i32_0 = arith.constant 0 : i32
    return %arg0, %c0_i32 : i32, i32
  }
}

</mosaic_0001>

<bundles_post_ra>
// kernel: mtfc_forward.1
= control target key start
LH: loop header
LB: loop body
LE: loop exit
PB: predicated region body
PF: predicated region fallthrough
CT: control target
= control target key end

     0   :  { %8 = vsyncpa [#allocation3], 0  ;;  %s277_s0 = inlined_call_operand.hbm [shape: f32[8,32], index: 0, kind: input, shape index: {}]   ;;  %s278_s1 = inlined_call_operand.hbm [shape: f32[32,128], index: 1, kind: input, shape index: {}]   ;;  %s279_s2 = inlined_call_operand.vmem [shape: f32[1,128], index: 2, kind: input, shape index: {}]   ;;  %s280_s3 = inlined_call_operand.vmem [shape: f32[8,14], index: 3, kind: output, shape index: {}]  }
   0x1   :  { %9 = vsyncpa [#allocation5], 0  ;;  %s213_s12 = smov [#allocation2]   ;;  %s214_s14 = smov [#allocation4]  }
   0x2   :  { %s16_s13 = sshll.u32 %s213_s12, 4  ;;  %s25_s15 = sshll.u32 %s214_s14, 4  ;;  %s17_s13 = int_to_ptr.vmem [resolvable:$true] %s16_s13  ;;  %s240_s15 = int_to_ptr.vmem [resolvable:$true] %s25_s15 }
   0x3   :  { %s165_s18 = scalar_lea.hbm %s277_s0, 128 }
   0x4   :  { %p166_p0 = scmp.ne.s32.totalorder %s277_s0, %s165_s18  ;;  %p169_p1 = scmp.lt.u32.totalorder %s165_s18, %s277_s0 }
   0x6   :  { %p171_p2 = pnand %p169_p1, %p166_p0 }
   0x8   :  { %174 = shalt.err (!%p171_p2)
}
   0x9   :  { %s175_s23 = scalar_lea.vmem %s17_s13, 128  ;;  %p180_p4 = scmp.lt.s32.totalorder %s17_s13, %s17_s13 }
   0xa   :  { %p176_p3 = scmp.ne.s32.totalorder %s17_s13, %s175_s23  ;;  %p181_p5 = scmp.lt.s32.totalorder %s175_s23, %s175_s23 }
   0xc   :  { %p182_p6 = por %p181_p5, %p180_p4 }
   0xe   :  { %p183_p7 = pnand %p182_p6, %p176_p3 }
  0x10   :  { %186 = shalt.err (!%p183_p7)
}
  0x11   :  { %19 = dma.hbm_to_vmem [thread:$0]  %s277_s0, 128, %s17_s13, [#allocation3]  }
  0x12   :  { %s187_s28 = scalar_lea.hbm %s278_s1, 512 }
  0x13   :  { %p188_p8 = scmp.ne.s32.totalorder %s278_s1, %s187_s28  ;;  %p191_p9 = scmp.lt.u32.totalorder %s187_s28, %s278_s1 }
  0x15   :  { %p193_p10 = pnand %p191_p9, %p188_p8 }
  0x17   :  { %196 = shalt.err (!%p193_p10)
}
  0x18   :  { %s197_s6 = scalar_lea.vmem %s240_s15, 512  ;;  %p202_p12 = scmp.lt.s32.totalorder %s240_s15, %s240_s15 }
  0x19   :  { %p198_p11 = scmp.ne.s32.totalorder %s240_s15, %s197_s6  ;;  %p203_p13 = scmp.lt.s32.totalorder %s197_s6, %s197_s6 }
  0x1b   :  { %p204_p0 = por %p203_p13, %p202_p12 }
  0x1d   :  { %p205_p1 = pnand %p204_p0, %p198_p11 }
  0x1f   :  { %208 = shalt.err (!%p205_p1)
}
  0x20   :  { %s215_s0 = smov 128   ;;  %s216_s7 = smov 8  }
  0x21   :  { %31 = dma.hbm_to_vmem [thread:$0]  %s278_s1, 512, %s240_s15, [#allocation5], %s215_s0, %s215_s0, %s216_s7  }
  0x22   :  { %209 = dma.done.wait [#allocation3], 128  }
  0x23   :  { %210 = vsyncadd [#allocation3], 4294967168 }
  0x24   :  { %211 = dma.done.wait [#allocation5], 512  }
  0x25   :  { %212 = vsyncadd [#allocation5], 4294966784  ;;  %v217_v0 = vmov 0.0|0.0   ;;  %vm218_vm0 = vmmov 0   ;;  %v219_v1 = vmov 0.0   ;;  %v41_v2 = vld [vmem:[#allocation4] sm:$0xff] }
  0x26   :  { %152 = vmatprep.subr.bf16.mxu0 %v217_v0  ;;  %149 = vmatprep.mubr.msk.f32.mxu0 %vm218_vm0, %v219_v1  ;;  %v42_v3 = vld [vmem:[#allocation4 + $0x8] sm:$0xff]  ;;  %v43_v4 = vld [vmem:[#allocation4 + $0x10] sm:$0xff]  ;;  %v44_v6 = vld [vmem:[#allocation4 + $0x18] sm:$0xff]  ;;  %vm52_vm1 = vcmask 261120   ;;  %vm126_vm2 = vcmask 113664  }
  0x27   :  { %v153_v5 = vpack.c.bf16 %v42_v3, %v41_v2  ;;  %v156_v7 = vpack.c.bf16 %v44_v6, %v43_v4  ;;  %v40_v8 = vld [vmem:[#allocation2] sm:$0xff]  ;;  %v134_v9 = vld [vmem:[%s279_s2] ss:$0 sm:$0xff] }
  0x29   :  { %154 = vmatpush3.bf16.msra.mxu0 %v153_v5 }
  0x2a   :  { %155 = vmatprep.subr.bf16.mxu0 %v217_v0 }
  0x2d   :  { %157 = vmatpush3.bf16.msra.mxu0 %v156_v7 }
  0x30   :  { %150 = vmatmul.mubr.msk.f32.vlgmr.msra.gmra.mrb[0].mxu0 %vm52_vm1, %v40_v8 }
 0x103   :  { %v122_v10 = vpop.f32.mrb[0].mxu0 }
 0x104   :  { %v123_v11 = vadd.f32 %v134_v9, %v122_v10  ;;  %v151_v12 = vpop.f32.mrb[1].mxu0 }
 0x106   :  { %127 = vst.msk [vmem:[%s280_s3] sm:$0xff] %vm126_vm2, %v123_v11 }
 0x107   :  { %132 = vsyncpa [#allocation3], 1 }
 0x108   :  { %133 = vsyncpa [#allocation5], 1 }

</bundles_post_ra>
